<compile_context>
chip_gen: v5e
topology: v5e:2x2
jax: 0.10.0
libtpu: 0.0.40
codegen_flags: <defaults>
</compile_context>

<pallas_src>
import jax
import jax.numpy as jnp
from jax.experimental import pallas as pl
from jax.experimental.pallas import tpu as pltpu

_LANE = 128
# Tiny, latency-dominated inputs take the gridless single-block path.
_SMALL_MAX_ELEMS = 1 << 16          # 64K elems = 256 KiB/input at f32
# Tiled-path block: (4096, 128) f32 = 2 MiB per input block; 2 inputs x 2
# buffers = 8 MiB double-buffered, inside every generation's scoped VMEM.
_BLOCK_ROWS = 4096

_KERNEL_DTYPES = (jnp.float32, jnp.bfloat16, jnp.float16)


def _native_or_f32(a):
    """Keep bf16/f16/f32 as-is (kernel casts on the fly); promote others."""
    return a if any(a.dtype == d for d in _KERNEL_DTYPES) else a.astype(jnp.float32)


def _kl_loss_small_kernel(x_ref, t_ref, out_ref):
    x = x_ref[...].astype(jnp.float32)
    t = t_ref[...].astype(jnp.float32)
    num = jnp.sum(jnp.log(x + 1e-12) * t)
    den = jnp.sum(t)
    eff = jnp.where(den < 1.0, jnp.float32(1.0), den)
    out_ref[0, 0] = -num / eff


def _kl_loss_tiled_kernel(rows_ref, x_ref, t_ref, num_out, den_out,
                          num_acc, den_acc):
    s = pl.program_id(0)                 # core-split index
    k = pl.program_id(1)                 # reduction (block) index within split
    n_k = pl.num_programs(1)

    @pl.when(k == 0)
    def _init():
        num_acc[...] = jnp.zeros_like(num_acc)
        den_acc[...] = jnp.zeros_like(den_acc)

    # Mask rows past the true end of the data: covers the ragged tail of the
    # last real block and any clamped duplicate block created by the split.
    row0 = (s * n_k + k) * _BLOCK_ROWS
    local = jax.lax.broadcasted_iota(jnp.int32, (_BLOCK_ROWS, 1), 0)
    valid = (row0 + local) < rows_ref[0]

    x = jnp.where(valid, x_ref[...].astype(jnp.float32), 1.0)   # log(1+eps)~0
    t = jnp.where(valid, t_ref[...].astype(jnp.float32), 0.0)

    # Per-lane partial sums into tiny scratch: one VPU add per data vreg in
    # steady state; the expensive cross-lane reduce happens once per split.
    num_acc[...] += jnp.sum(jnp.log(x + 1e-12) * t, axis=0, keepdims=True)
    den_acc[...] += jnp.sum(t, axis=0, keepdims=True)

    @pl.when(k == n_k - 1)
    def _finalize():
        num_out[0, 0] = jnp.sum(num_acc[...])
        den_out[0, 0] = jnp.sum(den_acc[...])


def kl_loss(inp, target, size_average=True):
    """Pallas implementation of KLLoss.forward (size_average is unused,
    matching the PyTorch module)."""
    x = _native_or_f32(jnp.reshape(inp, (-1,)))
    t = _native_or_f32(jnp.reshape(target, (-1,)))
    n = x.shape[0]

    # Lane-alignment pad (<=127 elems, only when needed). Zero padding is
    # exact: log(0 + 1e-12) * 0 == 0 and adds nothing to the denominator.
    n_pad = ((n + _LANE - 1) // _LANE) * _LANE
    if n_pad != n:
        x = jnp.pad(x, (0, n_pad - n))
        t = jnp.pad(t, (0, n_pad - n))
    rows = n_pad // _LANE
    x2 = x.reshape(rows, _LANE)       # layout-compatible, no data movement
    t2 = t.reshape(rows, _LANE)

    if n_pad <= _SMALL_MAX_ELEMS:
        # --- single-block path: one invocation, no grid, no scratch ---
        out = pl.pallas_call(
            _kl_loss_small_kernel,
            out_shape=jax.ShapeDtypeStruct((1, 1), jnp.float32),
            in_specs=[
                pl.BlockSpec(memory_space=pltpu.VMEM),
                pl.BlockSpec(memory_space=pltpu.VMEM),
            ],
            out_specs=pl.BlockSpec(memory_space=pltpu.SMEM),
        )(x2, t2)
        return out[0, 0]

    # --- tiled path: big lane-dense blocks + 2-way core split on v7x ---
    tiles_total = pl.cdiv(rows, _BLOCK_ROWS)
    num_splits = 2 if tiles_total >= 2 else 1
    tps = pl.cdiv(tiles_total, num_splits)   # tiles per split

    def data_map(s, k, rows_ref):
        # Clamp any fully out-of-range duplicate block (odd tiles_total) back
        # in bounds; it is fully masked in-kernel so it contributes nothing.
        return (jnp.minimum(s * tps + k, tiles_total - 1), 0)

    def part_map(s, k, rows_ref):
        return (s, 0)

    rows_arr = jnp.array([rows], dtype=jnp.int32)

    num_parts, den_parts = pl.pallas_call(
        _kl_loss_tiled_kernel,
        out_shape=(jax.ShapeDtypeStruct((num_splits, 1), jnp.float32),
                   jax.ShapeDtypeStruct((num_splits, 1), jnp.float32)),
        grid_spec=pltpu.PrefetchScalarGridSpec(
            num_scalar_prefetch=1,
            grid=(num_splits, tps),
            in_specs=[
                pl.BlockSpec((_BLOCK_ROWS, _LANE), data_map),
                pl.BlockSpec((_BLOCK_ROWS, _LANE), data_map),
            ],
            out_specs=(
                pl.BlockSpec((1, 1), part_map, memory_space=pltpu.SMEM),
                pl.BlockSpec((1, 1), part_map, memory_space=pltpu.SMEM),
            ),
            scratch_shapes=[
                pltpu.VMEM((1, _LANE), jnp.float32),
                pltpu.VMEM((1, _LANE), jnp.float32),
            ],
        ),
        compiler_params=pltpu.CompilerParams(
            dimension_semantics=(pltpu.PARALLEL, pltpu.ARBITRARY),
            vmem_limit_bytes=32 * 1024 * 1024,
        ),
    )(rows_arr, x2, t2)

    # Tiny final combine + eff clamp in JAX (per-split partials are scalars).
    num = jnp.sum(num_parts)
    den = jnp.sum(den_parts)
    eff = jnp.where(den < 1.0, jnp.float32(1.0), den)
    return -num / eff


def _reference(inp, target):
    x = inp.astype(jnp.float32)
    t = target.astype(jnp.float32)
    eff = jnp.sum(t)
    eff = jnp.where(eff < 1.0, 1.0, eff)
    return -(jnp.sum(jnp.log(x + 1e-12) * t)) / eff


if __name__ == "__main__":
    key = jax.random.PRNGKey(0)
    k1, k2, k3, k4 = jax.random.split(key, 4)

    # Small, module-consistent shape (NCHW): exercises the gridless path.
    inp = jax.random.uniform(k1, (2, 4, 16, 16), dtype=jnp.float32,
                             minval=1e-3, maxval=1.0)
    target = (jax.random.uniform(k2, (2, 4, 16, 16)) > 0.5).astype(jnp.float32)
    loss = kl_loss(inp, target)
    jax.block_until_ready(loss)
    ref = _reference(inp, target)
    assert jnp.allclose(loss, ref, rtol=1e-5, atol=1e-5), (loss, ref)

    # Larger, deliberately non-aligned shape: exercises the tiled path,
    # the core split, and the in-kernel ragged-tail masking.
    inp2 = jax.random.uniform(k3, (2, 9, 257, 129), dtype=jnp.float32,
                              minval=1e-3, maxval=1.0)
    target2 = (jax.random.uniform(k4, (2, 9, 257, 129)) > 0.5).astype(jnp.float32)
    loss2 = kl_loss(inp2, target2)
    jax.block_until_ready(loss2)
    ref2 = _reference(inp2, target2)
    assert jnp.allclose(loss2, ref2, rtol=1e-4, atol=1e-4), (loss2, ref2)

    print("KERNEL_OK")
</pallas_src>

<mosaic_0001>
module attributes {stable_mosaic.version = 11 : i64} {
  func.func @_kl_loss_small_kernel(%arg0: memref<16x128xf32, #tpu.memory_space<vmem>>, %arg1: memref<16x128xf32, #tpu.memory_space<vmem>>, %arg2: memref<1x1xf32, #tpu.memory_space<smem>>) attributes {dimension_semantics = [], scalar_prefetch = 0 : i64, scratch_operands = 0 : i64, tpu.core_type = #tpu.core_type<tc>} {
    %c0 = arith.constant 0 : index
    %c0_0 = arith.constant 0 : index
    %0 = vector.load %arg0[%c0, %c0_0] : memref<16x128xf32, #tpu.memory_space<vmem>>, vector<16x128xf32>
    %c0_1 = arith.constant 0 : index
    %c0_2 = arith.constant 0 : index
    %1 = vector.load %arg1[%c0_1, %c0_2] : memref<16x128xf32, #tpu.memory_space<vmem>>, vector<16x128xf32>
    %cst = arith.constant 9.99999996E-13 : f32
    %2 = vector.broadcast %cst : f32 to vector<16x128xf32>
    %3 = arith.addf %0, %2 : vector<16x128xf32>
    %4 = math.log %3 : vector<16x128xf32>
    %5 = arith.mulf %4, %1 : vector<16x128xf32>
    %6 = vector.shape_cast %5 : vector<16x128xf32> to vector<1x16x128xf32>
    %cst_3 = arith.constant dense<0.000000e+00> : vector<1xf32>
    %7 = vector.multi_reduction <add>, %6, %cst_3 [1, 2] : vector<1x16x128xf32> to vector<1xf32>
    %8 = vector.shape_cast %7 : vector<1xf32> to vector<1x1x1xf32>
    %9 = vector.extract %8[0, 0, 0] : f32 from vector<1x1x1xf32>
    %10 = vector.shape_cast %1 : vector<16x128xf32> to vector<1x16x128xf32>
    %cst_4 = arith.constant dense<0.000000e+00> : vector<1xf32>
    %11 = vector.multi_reduction <add>, %10, %cst_4 [1, 2] : vector<1x16x128xf32> to vector<1xf32>
    %12 = vector.shape_cast %11 : vector<1xf32> to vector<1x1x1xf32>
    %13 = vector.extract %12[0, 0, 0] : f32 from vector<1x1x1xf32>
    %cst_5 = arith.constant 1.000000e+00 : f32
    %14 = arith.cmpf olt, %13, %cst_5 : f32
    %cst_6 = arith.constant 1.000000e+00 : f32
    %15 = arith.select %14, %cst_6, %13 : f32
    %cst_7 = arith.constant 0.000000e+00 : f32
    %16 = arith.subf %cst_7, %9 : f32
    %17 = arith.divf %16, %15 : f32
    %c0_8 = arith.constant 0 : index
    %c0_9 = arith.constant 0 : index
    %18 = memref.load %arg2[%c0_8, %c0_9] : memref<1x1xf32, #tpu.memory_space<smem>>
    memref.store %17, %arg2[%c0_8, %c0_9] : memref<1x1xf32, #tpu.memory_space<smem>>
    return
  }
}

</mosaic_0001>

<bundles_post_ra>
// kernel: tpu_custom_call.1
= control target key start
LH: loop header
LB: loop body
LE: loop exit
PB: predicated region body
PF: predicated region fallthrough
CT: control target
= control target key end

     0   :  { %7 = vsyncpa [#allocation3], 0  ;;  %s227_s0 = inlined_call_operand.hbm [shape: f32[16,128], index: 0, kind: input, shape index: {}]   ;;  %s228_s1 = inlined_call_operand.hbm [shape: f32[16,128], index: 1, kind: input, shape index: {}]   ;;  %s229_s2 = inlined_call_operand.hbm [shape: f32[1,1], index: 2, kind: output, shape index: {}]  }
   0x1   :  { %8 = vsyncpa [#allocation6], 0 }
   0x2   :  { %9 = vsyncpa [#allocation4], 0  ;;  %s14_s11 = sshll.u32 %s227_s0, 4  ;;  %s198_s12 = smov [#allocation2]   ;;  %s15_s11 = int_to_ptr.hbm [resolvable:$true] %s14_s11 }
   0x3   :  { %s16_s13 = sshll.u32 %s198_s12, 4  ;;  %s27_s16 = sshll.u32 %s228_s1, 4  ;;  %s17_s13 = int_to_ptr.vmem [resolvable:$true] %s16_s13  ;;  %s28_s16 = int_to_ptr.hbm [resolvable:$true] %s27_s16 }
   0x4   :  { %s199_s17 = smov 128   ;;  %s200_s18 = smov 8  }
   0x5   :  { %22 = dma.hbm_to_vmem [thread:$0]  %s15_s11, 256, %s17_s13, [#allocation3], %s199_s17, %s199_s17, %s200_s18  }
   0x6   :  { %s201_s19 = smov [#allocation5]  }
   0x7   :  { %s29_s20 = sshll.u32 %s201_s19, 4  ;;  %s30_s20 = int_to_ptr.vmem [resolvable:$true] %s29_s20 }
   0x8   :  { %35 = dma.hbm_to_vmem [thread:$0]  %s28_s16, 256, %s30_s20, [#allocation6], %s199_s17, %s199_s17, %s200_s18  }
   0x9   :  { %192 = dma.done.wait [#allocation3], 256  }
   0xa   :  { %193 = vsyncadd [#allocation3], 4294967040 }
   0xb   :  { %194 = dma.done.wait [#allocation6], 256  }
   0xc   :  { %195 = vsyncadd [#allocation6], 4294967040  ;;  %v44_v0 = vld [vmem:[#allocation2] sm:$0xff]  ;;  %v45_v1 = vld [vmem:[#allocation2 + $0x8] sm:$0xff]  ;;  %s103_s23 = sshll.u32 %s229_s2, 4  ;;  %s202_s27 = smov [#allocation7]   ;;  %s104_s23 = int_to_ptr.hbm [resolvable:$true] %s103_s23 }
   0xd   :  { %v48_v2 = vadd.f32 1e-12, %v44_v0  ;;  %v49_v3 = vadd.f32 1e-12, %v45_v1  ;;  %v46_v5 = vld [vmem:[#allocation5] sm:$0xff]  ;;  %v47_v7 = vld [vmem:[#allocation5 + $0x8] sm:$0xff] }
   0xe   :  { %v66_v13 = vadd.f32 %v47_v7, %v46_v5 }
   0xf   :  { %126 = vlog2.f32 %v48_v2 }
  0x10   :  { %128 = vlog2.f32 %v49_v3 }
  0x15   :  { %v127_v4 = vpop.eup %126 }
  0x16   :  { %v129_v6 = vpop.eup %128  ;;  %v51_v8 = vmul.f32 0.6931472, %v127_v4 }
  0x17   :  { %v53_v9 = vmul.f32 0.6931472, %v129_v6 }
  0x18   :  { %v54_v10 = vmul.f32 %v51_v8, %v46_v5 }
  0x19   :  { %v55_v11 = vmul.f32 %v53_v9, %v47_v7 }
  0x1b   :  { %v56_v12 = vadd.f32 %v55_v11, %v54_v10 }
  0x1d   :  { %57 = vadd.xlane.f32.xlu0 %v56_v12 }
  0x25   :  { %67 = vadd.xlane.f32.xlu0 %v66_v13 }
  0x90   :  { %v58_v14 = vpop.xlane.xlu0 %57 }
  0x91   :  { %v59_v15 = vrot.slane %v58_v14, 4 }
  0x93   :  { %v60_v16 = vadd.f32 %v59_v15, %v58_v14 }
  0x95   :  { %v61_v17 = vrot.slane %v60_v16, 2 }
  0x97   :  { %v62_v18 = vadd.f32 %v61_v17, %v60_v16 }
  0x98   :  { %v68_v19 = vpop.xlane.xlu0 %67 }
  0x99   :  { %v69_v20 = vrot.slane %v68_v19, 4  ;;  %v63_v21 = vrot.slane %v62_v18, 1 }
  0x9b   :  { %v70_v22 = vadd.f32 %v69_v20, %v68_v19  ;;  %v64_v23 = vadd.f32 %v63_v21, %v62_v18 }
  0x9d   :  { %v71_v24 = vrot.slane %v70_v22, 2  ;;  %115 = vpush %v64_v23 }
  0x9f   :  { %v72_v25 = vadd.f32 %v71_v24, %v70_v22 }
  0xa1   :  { %v73_v26 = vrot.slane %v72_v25, 1 }
  0xa3   :  { %v74_v27 = vadd.f32 %v73_v26, %v72_v25 }
  0xa5   :  { %117 = vpush %v74_v27 }
  0xce   :  { %s116_s0 = spop %115 }
  0xcf   :  { %s78_s24 = ssub.f32 0.0, %s116_s0 }
  0xd6   :  { %s118_s1 = spop %117 }
  0xd7   :  { %p76_p0 = scmp.lt.f32.partialorder %s118_s1, 1.0 }
  0xd9   :  { %s231_s1 = smov (%p76_p0, %s118_s1), 1.0 }
  0xda   :  { %v79_v28 = vstv %s231_s1 }
  0xdb   :  { %130 = vrcp.f32 %v79_v28  ;;  %v91_v32 = vand.u32 2147483648, %v79_v28  ;;  %v89_v34 = vand.u32 2147483647, %v79_v28  ;;  %vm85_vm1 = vweird.f32 %v79_v28 }
  0xdd   :  { %v92_v36 = vor.u32 1.1754944e-38, %v91_v32  ;;  %vm90_vm3 = vcmp.eq.f32.partialorder %v89_v34, 8.507059e+37 }
  0xe1   :  { %v131_v29 = vpop.eup %130 }
  0xe2   :  { %v81_v30 = vmul.f32 %v131_v29, %v79_v28  ;;  %vm86_vm0 = vweird.f32 %v131_v29 }
  0xe3   :  { %vm87_vm2 = vmor %vm85_vm1, %vm86_vm0 }
  0xe4   :  { %v82_v31 = vsub.f32 1.0, %v81_v30 }
  0xe6   :  { %v83_v33 = vmul.f32 %v131_v29, %v82_v31 }
  0xe8   :  { %v84_v35 = vadd.f32 %v131_v29, %v83_v33 }
  0xea   :  { %v88_v37 = vsel %vm87_vm2, %v131_v29, %v84_v35 }
  0xeb   :  { %v93_v38 = vsel %vm90_vm3, %v92_v36, %v88_v37 }
  0xec   :  { %119 = vpush %v93_v38 }
 0x11d   :  { %s120_s25 = spop %119 }
 0x11e   :  { %s95_s26 = smul.f32 %s120_s25, %s78_s24 }
 0x120   :  { %97 = sst [smem:[#allocation7]] %s95_s26 }
 0x121   :  { %106 = dma.smem_to_hbm %s202_s27, 16, %s104_s23, [#allocation4]  }
 0x122   :  { %196 = dma.done.wait [#allocation4], 16  }
 0x123   :  { %197 = vsyncadd [#allocation4], 4294967280 }
 0x124   :  { %111 = sfence }
 0x125   :  { %112 = vsyncpa [#allocation3], 1 }
 0x126   :  { %113 = vsyncpa [#allocation6], 1 }
 0x127   :  { %114 = vsyncpa [#allocation4], 1 }

</bundles_post_ra>
